<compile_context>
chip_gen: v5e
topology: v5e:2x2
jax: 0.10.0
libtpu: 0.0.40
codegen_flags: <defaults>
</compile_context>

<pallas_src>
import functools

import jax
import jax.numpy as jnp
from jax import lax
from jax.experimental import pallas as pl
from jax.experimental.pallas import tpu as pltpu


def _round_up(v, m):
    return (v + m - 1) // m * m


# ---------------------------------------------------------------------------
# Stage 1 kernel: hoisted input projection for both directions.
#   acc = x_block @ [W_ih_f | W_ih_b] + [b_f | b_b]   -> split into fwd / bwd.
# ---------------------------------------------------------------------------
def _in_proj_kernel(G, x_ref, w_ref, b_ref, gf_ref, gb_ref):
    acc = (jnp.dot(x_ref[...], w_ref[...], preferred_element_type=jnp.float32)
           + b_ref[...])
    gf_ref[...] = acc[:, :G]
    gb_ref[...] = acc[:, G:]


# ---------------------------------------------------------------------------
# Stage 2 kernel: serial bidirectional recurrence, TT timesteps per grid step.
# Combined state scratches hold [h_fwd | h_bwd] / [c_fwd | c_bwd] (Bp, 2*Hp).
# ---------------------------------------------------------------------------
def _bilstm_rec_kernel(TT, Hp, fuse,
                       lens_ref, gxf_ref, gxb_ref, whh_ref,
                       outf_ref, outb_ref, hn_ref, cn_ref,
                       h_st, c_st):
    i = pl.program_id(0)
    nT = pl.num_programs(0)
    G = 4 * Hp
    T_pad = nT * TT

    @pl.when(i == 0)
    def _():
        h_st[...] = jnp.zeros_like(h_st)
        c_st[...] = jnp.zeros_like(c_st)

    lens = lens_ref[...]                      # (Bp, 1) int32

    def cell(gates, c):
        ig = jax.nn.sigmoid(gates[:, 0 * Hp:1 * Hp])
        fg = jax.nn.sigmoid(gates[:, 1 * Hp:2 * Hp])
        gg = jnp.tanh(gates[:, 2 * Hp:3 * Hp])
        og = jax.nn.sigmoid(gates[:, 3 * Hp:4 * Hp])
        c_new = fg * c + ig * gg
        h_new = og * jnp.tanh(c_new)
        return h_new, c_new

    def step(j, carry):
        t_f = i * TT + j                      # forward global time
        t_b = T_pad - 1 - t_f                 # backward global time
        jr = TT - 1 - j                       # local index of t_b in its chunk

        # Recurrent projection(s): h @ W_hh (the only work left on the
        # serial critical path).
        if fuse:
            rec = jnp.dot(h_st[...], whh_ref[...],
                          preferred_element_type=jnp.float32)            # (Bp, 2G)
            rec_f, rec_b = rec[:, :G], rec[:, G:]
        else:
            rec_f = jnp.dot(h_st[:, :Hp], whh_ref[0],
                            preferred_element_type=jnp.float32)
            rec_b = jnp.dot(h_st[:, Hp:], whh_ref[1],
                            preferred_element_type=jnp.float32)

        gates_f = gxf_ref[j] + rec_f          # x-gates precomputed in stage 1
        gates_b = gxb_ref[jr] + rec_b

        h_f, c_f = cell(gates_f, c_st[:, :Hp])
        h_b, c_b = cell(gates_b, c_st[:, Hp:])

        valid_f = lens > t_f                  # (Bp, 1) packed-sequence mask
        valid_b = lens > t_b

        h_st[:, :Hp] = jnp.where(valid_f, h_f, h_st[:, :Hp])
        c_st[:, :Hp] = jnp.where(valid_f, c_f, c_st[:, :Hp])
        h_st[:, Hp:] = jnp.where(valid_b, h_b, h_st[:, Hp:])
        c_st[:, Hp:] = jnp.where(valid_b, c_b, c_st[:, Hp:])

        outf_ref[j] = jnp.where(valid_f, h_f, 0.0)
        outb_ref[jr] = jnp.where(valid_b, h_b, 0.0)
        return carry

    lax.fori_loop(0, TT, step, 0, unroll=True)

    # Resident output blocks: write the final states only once.
    @pl.when(i == nT - 1)
    def _():
        hn_ref[0] = h_st[:, :Hp]
        hn_ref[1] = h_st[:, Hp:]
        cn_ref[0] = c_st[:, :Hp]
        cn_ref[1] = c_st[:, Hp:]


def encoder_forward(x, input_lengths, params, *, time_chunk=16):
    """x: (B, T, E) batch_first; input_lengths: (B,).
    Returns (outputs (B, T, 2H), (h_n (2, B, H), c_n (2, B, H)))."""
    B, T, E = x.shape
    H = params["w_hh_f"].shape[0]
    f32 = jnp.float32

    # Padding for lane/sublane density; padded lanes/rows/steps stay exactly 0.
    Hp = _round_up(H, 128)
    Bp = _round_up(B, 8)
    TT = min(time_chunk, T)
    Tp = _round_up(T, TT)
    nT = Tp // TT
    G = 4 * Hp

    def pad_gate_cols(w):                     # (..., 4H) -> (..., 4Hp), per-gate
        lead = w.shape[:-1]
        w4 = w.reshape(lead + (4, H))
        w4 = jnp.pad(w4, [(0, 0)] * len(lead) + [(0, 0), (0, Hp - H)])
        return w4.reshape(lead + (G,))

    w_ih_f = pad_gate_cols(params["w_ih_f"].astype(f32))            # (E, G)
    w_ih_b = pad_gate_cols(params["w_ih_b"].astype(f32))
    b_f = pad_gate_cols(params["b_f"].astype(f32))                  # (1, G)
    b_b = pad_gate_cols(params["b_b"].astype(f32))
    w_hh_f = jnp.pad(pad_gate_cols(params["w_hh_f"].astype(f32)),
                     ((0, Hp - H), (0, 0)))                         # (Hp, G)
    w_hh_b = jnp.pad(pad_gate_cols(params["w_hh_b"].astype(f32)),
                     ((0, Hp - H), (0, 0)))

    fuse = Hp <= 128
    if fuse:
        # Block-diagonal (2Hp, 2G): both directions' recurrences in one MXU issue.
        w_hh = jnp.zeros((2 * Hp, 2 * G), f32)
        w_hh = w_hh.at[:Hp, :G].set(w_hh_f).at[Hp:, G:].set(w_hh_b)
        whh_spec = pl.BlockSpec((2 * Hp, 2 * G), lambda i: (0, 0))
    else:
        w_hh = jnp.stack([w_hh_f, w_hh_b], axis=0)                  # (2, Hp, G)
        whh_spec = pl.BlockSpec((2, Hp, G), lambda i: (0, 0, 0))

    # Time-major, padded input and lengths.
    x_tm = jnp.transpose(x.astype(f32), (1, 0, 2))                  # (T, B, E)
    x_tm = jnp.pad(x_tm, ((0, Tp - T), (0, Bp - B), (0, 0)))        # (Tp, Bp, E)
    lens = jnp.pad(input_lengths.astype(jnp.int32), (0, Bp - B)).reshape(Bp, 1)

    # ----------------- stage 1: hoisted input projection --------------------
    M = Tp * Bp
    tm = TT * Bp                              # divides M exactly
    x2d = x_tm.reshape(M, E)
    w_ih_all = jnp.concatenate([w_ih_f, w_ih_b], axis=1)            # (E, 2G)
    b_all = jnp.concatenate([b_f, b_b], axis=1)                     # (1, 2G)

    gxf2d, gxb2d = pl.pallas_call(
        functools.partial(_in_proj_kernel, G),
        grid_spec=pltpu.PrefetchScalarGridSpec(
            num_scalar_prefetch=0,
            grid=(M // tm,),
            in_specs=[
                pl.BlockSpec((tm, E), lambda i: (i, 0)),
                pl.BlockSpec((E, 2 * G), lambda i: (0, 0)),
                pl.BlockSpec((1, 2 * G), lambda i: (0, 0)),
            ],
            out_specs=[
                pl.BlockSpec((tm, G), lambda i: (i, 0)),
                pl.BlockSpec((tm, G), lambda i: (i, 0)),
            ],
        ),
        out_shape=(jax.ShapeDtypeStruct((M, G), f32),
                   jax.ShapeDtypeStruct((M, G), f32)),
        compiler_params=pltpu.CompilerParams(
            dimension_semantics=("parallel",)),
    )(x2d, w_ih_all, b_all)

    gx_f = gxf2d.reshape(Tp, Bp, G)
    gx_b = gxb2d.reshape(Tp, Bp, G)

    # ----------------- stage 2: serial bidirectional recurrence -------------
    kernel = functools.partial(_bilstm_rec_kernel, TT, Hp, fuse)

    out_f, out_b, h_n, c_n = pl.pallas_call(
        kernel,
        grid_spec=pltpu.PrefetchScalarGridSpec(
            num_scalar_prefetch=0,
            grid=(nT,),
            in_specs=[
                pl.BlockSpec((Bp, 1), lambda i: (0, 0)),                  # lengths
                pl.BlockSpec((TT, Bp, G), lambda i: (i, 0, 0)),           # fwd gates
                pl.BlockSpec((TT, Bp, G), lambda i: (nT - 1 - i, 0, 0)),  # bwd gates
                whh_spec,                                                 # W_hh
            ],
            out_specs=[
                pl.BlockSpec((TT, Bp, Hp), lambda i: (i, 0, 0)),          # fwd out
                pl.BlockSpec((TT, Bp, Hp), lambda i: (nT - 1 - i, 0, 0)), # bwd out
                pl.BlockSpec((2, Bp, Hp), lambda i: (0, 0, 0)),           # h_n
                pl.BlockSpec((2, Bp, Hp), lambda i: (0, 0, 0)),           # c_n
            ],
            scratch_shapes=[pltpu.VMEM((Bp, 2 * Hp), f32),                # [h_f|h_b]
                            pltpu.VMEM((Bp, 2 * Hp), f32)],               # [c_f|c_b]
        ),
        out_shape=(
            jax.ShapeDtypeStruct((Tp, Bp, Hp), f32),
            jax.ShapeDtypeStruct((Tp, Bp, Hp), f32),
            jax.ShapeDtypeStruct((2, Bp, Hp), f32),
            jax.ShapeDtypeStruct((2, Bp, Hp), f32),
        ),
        compiler_params=pltpu.CompilerParams(
            dimension_semantics=("arbitrary",)),      # time recurrence is serial
    )(lens, gx_f, gx_b, w_hh)

    outputs = jnp.concatenate([out_f[:T, :B, :H], out_b[:T, :B, :H]], axis=-1)
    outputs = jnp.transpose(outputs, (1, 0, 2))       # (B, T, 2H) batch_first
    return outputs, (h_n[:, :B, :H], c_n[:, :B, :H])


def init_params(key, E, H):
    """Deterministic init mimicking nn.LSTM's U(-1/sqrt(H), 1/sqrt(H)).
    Weights stored pre-transposed: (E, 4H) / (H, 4H); gate order i, f, g, o.
    Bias is the fused b_ih + b_hh, shape (1, 4H)."""
    ks = jax.random.split(key, 8)
    s = 1.0 / float(H) ** 0.5
    u = lambda k, shape: jax.random.uniform(k, shape, jnp.float32, -s, s)
    return dict(
        w_ih_f=u(ks[0], (E, 4 * H)), w_hh_f=u(ks[1], (H, 4 * H)),
        b_f=u(ks[2], (1, 4 * H)) + u(ks[3], (1, 4 * H)),
        w_ih_b=u(ks[4], (E, 4 * H)), w_hh_b=u(ks[5], (H, 4 * H)),
        b_b=u(ks[6], (1, 4 * H)) + u(ks[7], (1, 4 * H)),
    )


def encoder_ref(x, input_lengths, params, H):
    """Pure-JAX reference reproducing packed-sequence bidirectional LSTM."""
    B, T, E = x.shape
    lens = input_lengths.astype(jnp.int32).reshape(B, 1)

    def cell(xt, h, c, wih, whh, b):
        g = xt @ wih + h @ whh + b
        i = jax.nn.sigmoid(g[:, :H])
        f = jax.nn.sigmoid(g[:, H:2 * H])
        gg = jnp.tanh(g[:, 2 * H:3 * H])
        o = jax.nn.sigmoid(g[:, 3 * H:])
        c2 = f * c + i * gg
        return o * jnp.tanh(c2), c2

    h = jnp.zeros((B, H)); c = jnp.zeros((B, H)); outs_f = []
    for t in range(T):
        hn, cn = cell(x[:, t], h, c, params["w_ih_f"], params["w_hh_f"], params["b_f"])
        m = lens > t
        h = jnp.where(m, hn, h); c = jnp.where(m, cn, c)
        outs_f.append(jnp.where(m, hn, 0.0))
    hf_fin, cf_fin = h, c

    h = jnp.zeros((B, H)); c = jnp.zeros((B, H)); outs_b = [None] * T
    for t in range(T - 1, -1, -1):
        hn, cn = cell(x[:, t], h, c, params["w_ih_b"], params["w_hh_b"], params["b_b"])
        m = lens > t
        h = jnp.where(m, hn, h); c = jnp.where(m, cn, c)
        outs_b[t] = jnp.where(m, hn, 0.0)

    out = jnp.concatenate([jnp.stack(outs_f, 1), jnp.stack(outs_b, 1)], axis=-1)
    return out, (jnp.stack([hf_fin, h], 0), jnp.stack([cf_fin, c], 0))


if __name__ == "__main__":
    B, T, E, H = 4, 8, 16, 32
    key = jax.random.PRNGKey(0)
    k_x, k_p = jax.random.split(key)

    x = jax.random.normal(k_x, (B, T, E), jnp.float32)      # batch_first, like PyTorch
    input_lengths = jnp.array([8, 5, 3, 6], jnp.int32)      # max length == T
    params = init_params(k_p, E, H)

    outputs, (h_n, c_n) = encoder_forward(x, input_lengths, params)
    jax.block_until_ready((outputs, h_n, c_n))

    out_ref, (hn_ref, cn_ref) = encoder_ref(x, input_lengths, params, H)
    assert outputs.shape == (B, T, 2 * H)
    assert h_n.shape == (2, B, H) and c_n.shape == (2, B, H)
    assert jnp.allclose(outputs, out_ref, atol=1e-4, rtol=1e-4)
    assert jnp.allclose(h_n, hn_ref, atol=1e-4, rtol=1e-4)
    assert jnp.allclose(c_n, cn_ref, atol=1e-4, rtol=1e-4)

    print("KERNEL_OK")
</pallas_src>

<mosaic_0001>
module attributes {stable_mosaic.version = 11 : i64} {
  func.func @_in_proj_kernel(%arg0: i32, %arg1: memref<64x16xf32, #tpu.memory_space<vmem>>, %arg2: memref<16x1024xf32, #tpu.memory_space<vmem>>, %arg3: memref<1x1024xf32, #tpu.memory_space<vmem>>, %arg4: memref<64x512xf32, #tpu.memory_space<vmem>>, %arg5: memref<64x512xf32, #tpu.memory_space<vmem>>) attributes {dimension_semantics = [#tpu.dimension_semantics<parallel>], iteration_bounds = array<i64: 1>, scalar_prefetch = 0 : i64, scratch_operands = 0 : i64, tpu.core_type = #tpu.core_type<tc>, window_params = [{transform_indices = @transform_0, window_bounds = array<i64: 64, 16>}, {pipeline_mode = #tpu.pipeline_mode<synchronous>, transform_indices = @transform_1, window_bounds = array<i64: 16, 1024>}, {pipeline_mode = #tpu.pipeline_mode<synchronous>, transform_indices = @transform_2, window_bounds = array<i64: 1, 1024>}, {transform_indices = @transform_3, window_bounds = array<i64: 64, 512>}, {transform_indices = @transform_4, window_bounds = array<i64: 64, 512>}]} {
    %c0 = arith.constant 0 : index
    %c0_0 = arith.constant 0 : index
    %0 = vector.load %arg1[%c0, %c0_0] : memref<64x16xf32, #tpu.memory_space<vmem>>, vector<64x16xf32>
    %c0_1 = arith.constant 0 : index
    %c0_2 = arith.constant 0 : index
    %1 = vector.load %arg2[%c0_1, %c0_2] : memref<16x1024xf32, #tpu.memory_space<vmem>>, vector<16x1024xf32>
    %cst = arith.constant dense<0.000000e+00> : vector<64x1024xf32>
    %2 = tpu.matmul %0, %1, %cst {dimension_numbers = #tpu.dot_dimension_numbers<[1], [0], [0], [1], [0, 0, 1, 1], [], []>} : vector<64x16xf32>, vector<16x1024xf32>, vector<64x1024xf32> -> vector<64x1024xf32>
    %c0_3 = arith.constant 0 : index
    %c0_4 = arith.constant 0 : index
    %3 = vector.load %arg3[%c0_3, %c0_4] : memref<1x1024xf32, #tpu.memory_space<vmem>>, vector<1x1024xf32>
    %4 = vector.broadcast %3 : vector<1x1024xf32> to vector<64x1024xf32>
    %5 = arith.addf %2, %4 : vector<64x1024xf32>
    %6 = vector.extract_strided_slice %5 {offsets = [0, 0], sizes = [64, 512], strides = [1, 1]} : vector<64x1024xf32> to vector<64x512xf32>
    %c0_5 = arith.constant 0 : index
    %c0_6 = arith.constant 0 : index
    %7 = vector.load %arg4[%c0_5, %c0_6] : memref<64x512xf32, #tpu.memory_space<vmem>>, vector<64x512xf32>
    tpu.vector_store %arg4[%c0_5, %c0_6], %6 {strides = array<i32>} : memref<64x512xf32, #tpu.memory_space<vmem>>, vector<64x512xf32>,
    %8 = vector.extract_strided_slice %5 {offsets = [0, 512], sizes = [64, 512], strides = [1, 1]} : vector<64x1024xf32> to vector<64x512xf32>
    %c0_7 = arith.constant 0 : index
    %c0_8 = arith.constant 0 : index
    %9 = vector.load %arg5[%c0_7, %c0_8] : memref<64x512xf32, #tpu.memory_space<vmem>>, vector<64x512xf32>
    tpu.vector_store %arg5[%c0_7, %c0_8], %8 {strides = array<i32>} : memref<64x512xf32, #tpu.memory_space<vmem>>, vector<64x512xf32>,
    return
  }
  func.func @transform_0(%arg0: i32) -> (i32, i32) {
    %c0_i32 = arith.constant 0 : i32
    %c0_i32_0 = arith.constant 0 : i32
    return %arg0, %c0_i32 : i32, i32
  }
  func.func @transform_1(%arg0: i32) -> (i32, i32) {
    %c0_i32 = arith.constant 0 : i32
    %c0_i32_0 = arith.constant 0 : i32
    %c0_i32_1 = arith.constant 0 : i32
    return %c0_i32, %c0_i32_0 : i32, i32
  }
  func.func @transform_2(%arg0: i32) -> (i32, i32) {
    %c0_i32 = arith.constant 0 : i32
    %c0_i32_0 = arith.constant 0 : i32
    %c0_i32_1 = arith.constant 0 : i32
    return %c0_i32, %c0_i32_0 : i32, i32
  }
  func.func @transform_3(%arg0: i32) -> (i32, i32) {
    %c0_i32 = arith.constant 0 : i32
    %c0_i32_0 = arith.constant 0 : i32
    return %arg0, %c0_i32 : i32, i32
  }
  func.func @transform_4(%arg0: i32) -> (i32, i32) {
    %c0_i32 = arith.constant 0 : i32
    %c0_i32_0 = arith.constant 0 : i32
    return %arg0, %c0_i32 : i32, i32
  }
}

</mosaic_0001>

<bundles_post_ra>
// kernel: tpu_custom_call.1
= control target key start
LH: loop header
LB: loop body
LE: loop exit
PB: predicated region body
PF: predicated region fallthrough
CT: control target
= control target key end

     0   :  { %10 = vsyncpa [#allocation3], 0  ;;  %s917_s0 = inlined_call_operand.vmem [shape: f32[64,16], index: 0, kind: input, shape index: {}]   ;;  %s918_s1 = inlined_call_operand.hbm [shape: f32[16,1024], index: 1, kind: input, shape index: {}]   ;;  %s919_s2 = inlined_call_operand.vmem [shape: f32[1,1024], index: 2, kind: input, shape index: {}]   ;;  %s920_s3 = inlined_call_operand.hbm [shape: f32[64,512], index: 3, kind: output, shape index: {0}]   ;;  %s921_s4 = inlined_call_operand.hbm [shape: f32[64,512], index: 4, kind: output, shape index: {1}]  }
   0x1   :  { %11 = vsyncpa [#allocation4], 0 }
   0x2   :  { %12 = vsyncpa [#allocation7], 0  ;;  %s19_s17 = sshll.u32 %s918_s1, 4  ;;  %s679_s18 = smov [#allocation2]   ;;  %s20_s17 = int_to_ptr.hbm [resolvable:$true] %s19_s17 }
   0x3   :  { %s21_s19 = sshll.u32 %s679_s18, 4  ;;  %s680_s20 = smov 1024   ;;  %s22_s19 = int_to_ptr.vmem [resolvable:$true] %s21_s19 }
   0x4   :  { %s681_s21 = smov 64  }
   0x5   :  { %27 = dma.hbm_to_vmem [thread:$0]  %s20_s17, 2048, %s22_s19, [#allocation3], %s680_s20, %s680_s20, %s681_s21  }
   0x6   :  { %673 = dma.done.wait [#allocation3], 2048  }
   0x7   :  { %674 = vsyncadd [#allocation3], 4294965248  ;;  %v52_v0 = vld [vmem:[#allocation2 + $0x50] sm:$0xff]  ;;  %v53_v1 = vld [vmem:[#allocation2 + $0x58] sm:$0xff]  ;;  %vm76_vm0 = vcmask 130048   ;;  %s499_s15 = sshll.u32 %s920_s3, 4  ;;  %s500_s15 = int_to_ptr.hbm [resolvable:$true] %s499_s15 }
   0x8   :  { %v44_v2 = vld [vmem:[#allocation2 + $0x10] sm:$0xff]  ;;  %197 = vmatpush.msra.mxu2 %v52_v0  ;;  %238 = vmatpush.msra.mxu3 %v53_v1  ;;  %v45_v3 = vld [vmem:[#allocation2 + $0x18] sm:$0xff]  ;;  %v717_v4 = vld [vmem:[%s917_s0] sm:$0xff]  ;;  %s683_s3 = smov 512   ;;  %s684_s16 = smov 32  }
   0x9   :  { %v56_v5 = vld [vmem:[#allocation2 + $0x70] sm:$0xff]  ;;  %v57_v6 = vld [vmem:[#allocation2 + $0x78] sm:$0xff]  ;;  %v50_v7 = vld [vmem:[#allocation2 + $0x40] sm:$0xff]  ;;  %s685_s17 = smov [#allocation6]   ;;  %s512_s21 = sshll.u32 %s921_s4, 4  ;;  %s513_s21 = int_to_ptr.hbm [resolvable:$true] %s512_s21 }
   0xa   :  { %198 = vmatpush.msra.mxu2 %v44_v2  ;;  %239 = vmatpush.msra.mxu3 %v45_v3  ;;  %v51_v8 = vld [vmem:[#allocation2 + $0x48] sm:$0xff]  ;;  %v42_v9 = vld [vmem:[#allocation2] sm:$0xff]  ;;  %v48_v11 = vld [vmem:[#allocation2 + $0x30] sm:$0xff]  ;;  %s510_s18 = sshll.u32 %s685_s17, 4  ;;  %s511_s18 = int_to_ptr.vmem [resolvable:$true] %s510_s18 }
   0xb   :  { %546 = vmatmul.msk.f32.vlgmr.msra.gmra.mxu2 %vm76_vm0, %v717_v4  ;;  %554 = vmatmul.msk.f32.vlgmr.msra.gmra.mxu3 %vm76_vm0, %v717_v4  ;;  %v43_v10 = vld [vmem:[#allocation2 + $0x8] sm:$0xff]  ;;  %v49_v12 = vld [vmem:[#allocation2 + $0x38] sm:$0xff]  ;;  %v54_v13 = vld [vmem:[#allocation2 + $0x60] sm:$0xff] }
   0xc   :  { %361 = vmatpush.msrb.mxu2 %v56_v5  ;;  %402 = vmatpush.msrb.mxu3 %v57_v6  ;;  %v55_v14 = vld [vmem:[#allocation2 + $0x68] sm:$0xff]  ;;  %v46_v16 = vld [vmem:[#allocation2 + $0x20] sm:$0xff]  ;;  %v36_v18 = vld [vmem:[%s917_s0 + $0x10] sm:$0xff] }
   0xd   :  { %115 = vmatpush.msra.mxu0 %v50_v7  ;;  %156 = vmatpush.msra.mxu1 %v51_v8  ;;  %v35_v15 = vld [vmem:[%s917_s0 + $0x8] sm:$0xff]  ;;  %v37_v19 = vld [vmem:[%s917_s0 + $0x18] sm:$0xff]  ;;  %v38_v20 = vld [vmem:[%s917_s0 + $0x20] sm:$0xff] }
   0xe   :  { %362 = vmatpush.msrb.mxu2 %v48_v11  ;;  %403 = vmatpush.msrb.mxu3 %v49_v12  ;;  %v47_v17 = vld [vmem:[#allocation2 + $0x28] sm:$0xff]  ;;  %v40_v22 = vld [vmem:[%s917_s0 + $0x30] sm:$0xff]  ;;  %v41_v23 = vld [vmem:[%s917_s0 + $0x38] sm:$0xff] }
   0xf   :  { %116 = vmatpush.msra.mxu0 %v42_v9  ;;  %157 = vmatpush.msra.mxu1 %v43_v10  ;;  %v39_v21 = vld [vmem:[%s917_s0 + $0x28] sm:$0xff]  ;;  %v813_v24 = vld [vmem:[%s919_s2] sm:$0xff]  ;;  %s682_s2 = smov [#allocation5]  }
  0x10   :  { %530 = vmatmul.msk.f32.vlgmr.msra.gmra.mxu0 %vm76_vm0, %v717_v4  ;;  %538 = vmatmul.msk.f32.vlgmr.msra.gmra.mxu1 %vm76_vm0, %v717_v4  ;;  %v818_v25 = vperm.slane %v813_v24, 0  ;;  %v821_v26 = vperm.slane %v813_v24, 1  ;;  %v824_v27 = vperm.slane %v813_v24, 2  ;;  %v827_v28 = vperm.slane %v813_v24, 3  ;;  %s497_s12 = sshll.u32 %s682_s2, 4  ;;  %s498_s12 = int_to_ptr.vmem [resolvable:$true] %s497_s12 }
  0x11   :  { %279 = vmatpush.msrb.mxu0 %v54_v13  ;;  %320 = vmatpush.msrb.mxu1 %v55_v14 }
  0x13   :  { %547 = vmatmul.msk.f32.gmra.mxu2 %vm76_vm0, %v35_v15  ;;  %555 = vmatmul.msk.f32.gmra.mxu3 %vm76_vm0, %v35_v15 }
  0x14   :  { %280 = vmatpush.msrb.mxu0 %v46_v16  ;;  %321 = vmatpush.msrb.mxu1 %v47_v17 }
  0x18   :  { %531 = vmatmul.msk.f32.gmra.mxu0 %vm76_vm0, %v35_v15  ;;  %539 = vmatmul.msk.f32.gmra.mxu1 %vm76_vm0, %v35_v15 }
  0x1b   :  { %548 = vmatmul.msk.f32.gmra.mxu2 %vm76_vm0, %v36_v18  ;;  %556 = vmatmul.msk.f32.gmra.mxu3 %vm76_vm0, %v36_v18 }
  0x20   :  { %532 = vmatmul.msk.f32.gmra.mxu0 %vm76_vm0, %v36_v18  ;;  %540 = vmatmul.msk.f32.gmra.mxu1 %vm76_vm0, %v36_v18 }
  0x23   :  { %549 = vmatmul.msk.f32.gmra.mxu2 %vm76_vm0, %v37_v19  ;;  %557 = vmatmul.msk.f32.gmra.mxu3 %vm76_vm0, %v37_v19 }
  0x28   :  { %533 = vmatmul.msk.f32.gmra.mxu0 %vm76_vm0, %v37_v19  ;;  %541 = vmatmul.msk.f32.gmra.mxu1 %vm76_vm0, %v37_v19 }
  0x2b   :  { %550 = vmatmul.msk.f32.gmra.mxu2 %vm76_vm0, %v38_v20  ;;  %558 = vmatmul.msk.f32.gmra.mxu3 %vm76_vm0, %v38_v20 }
  0x30   :  { %534 = vmatmul.msk.f32.gmra.mxu0 %vm76_vm0, %v38_v20  ;;  %542 = vmatmul.msk.f32.gmra.mxu1 %vm76_vm0, %v38_v20 }
  0x33   :  { %551 = vmatmul.msk.f32.gmra.mxu2 %vm76_vm0, %v39_v21  ;;  %559 = vmatmul.msk.f32.gmra.mxu3 %vm76_vm0, %v39_v21 }
  0x38   :  { %535 = vmatmul.msk.f32.gmra.mxu0 %vm76_vm0, %v39_v21  ;;  %543 = vmatmul.msk.f32.gmra.mxu1 %vm76_vm0, %v39_v21 }
  0x3b   :  { %552 = vmatmul.msk.f32.gmra.mxu2 %vm76_vm0, %v40_v22  ;;  %560 = vmatmul.msk.f32.gmra.mxu3 %vm76_vm0, %v40_v22 }
  0x40   :  { %536 = vmatmul.msk.f32.gmra.mxu0 %vm76_vm0, %v40_v22  ;;  %544 = vmatmul.msk.f32.gmra.mxu1 %vm76_vm0, %v40_v22 }
  0x43   :  { %553 = vmatmul.msk.f32.gmra.mxu2 %vm76_vm0, %v41_v23  ;;  %561 = vmatmul.msk.f32.gmra.mxu3 %vm76_vm0, %v41_v23 }
  0x48   :  { %537 = vmatmul.msk.f32.gmra.mxu0 %vm76_vm0, %v41_v23  ;;  %545 = vmatmul.msk.f32.gmra.mxu1 %vm76_vm0, %v41_v23 }
  0x4b   :  { %578 = vmatmul.msk.f32.vlgmr.msrb.gmra.mxu2 %vm76_vm0, %v717_v4  ;;  %586 = vmatmul.msk.f32.vlgmr.msrb.gmra.mxu3 %vm76_vm0, %v717_v4 }
  0x50   :  { %562 = vmatmul.msk.f32.vlgmr.msrb.gmra.mxu0 %vm76_vm0, %v717_v4  ;;  %570 = vmatmul.msk.f32.vlgmr.msrb.gmra.mxu1 %vm76_vm0, %v717_v4 }
  0x53   :  { %579 = vmatmul.msk.f32.gmra.mxu2 %vm76_vm0, %v35_v15  ;;  %587 = vmatmul.msk.f32.gmra.mxu3 %vm76_vm0, %v35_v15 }
  0x58   :  { %563 = vmatmul.msk.f32.gmra.mxu0 %vm76_vm0, %v35_v15  ;;  %571 = vmatmul.msk.f32.gmra.mxu1 %vm76_vm0, %v35_v15 }
  0x5b   :  { %580 = vmatmul.msk.f32.gmra.mxu2 %vm76_vm0, %v36_v18  ;;  %588 = vmatmul.msk.f32.gmra.mxu3 %vm76_vm0, %v36_v18 }
  0x60   :  { %564 = vmatmul.msk.f32.gmra.mxu0 %vm76_vm0, %v36_v18  ;;  %572 = vmatmul.msk.f32.gmra.mxu1 %vm76_vm0, %v36_v18 }
  0x63   :  { %581 = vmatmul.msk.f32.gmra.mxu2 %vm76_vm0, %v37_v19  ;;  %589 = vmatmul.msk.f32.gmra.mxu3 %vm76_vm0, %v37_v19 }
  0x68   :  { %565 = vmatmul.msk.f32.gmra.mxu0 %vm76_vm0, %v37_v19  ;;  %573 = vmatmul.msk.f32.gmra.mxu1 %vm76_vm0, %v37_v19 }
  0x6b   :  { %582 = vmatmul.msk.f32.gmra.mxu2 %vm76_vm0, %v38_v20  ;;  %590 = vmatmul.msk.f32.gmra.mxu3 %vm76_vm0, %v38_v20 }
  0x70   :  { %566 = vmatmul.msk.f32.gmra.mxu0 %vm76_vm0, %v38_v20  ;;  %574 = vmatmul.msk.f32.gmra.mxu1 %vm76_vm0, %v38_v20 }
  0x73   :  { %583 = vmatmul.msk.f32.gmra.mxu2 %vm76_vm0, %v39_v21  ;;  %591 = vmatmul.msk.f32.gmra.mxu3 %vm76_vm0, %v39_v21 }
  0x78   :  { %567 = vmatmul.msk.f32.gmra.mxu0 %vm76_vm0, %v39_v21  ;;  %575 = vmatmul.msk.f32.gmra.mxu1 %vm76_vm0, %v39_v21 }
  0x7b   :  { %584 = vmatmul.msk.f32.gmra.mxu2 %vm76_vm0, %v40_v22  ;;  %592 = vmatmul.msk.f32.gmra.mxu3 %vm76_vm0, %v40_v22 }
  0x80   :  { %568 = vmatmul.msk.f32.gmra.mxu0 %vm76_vm0, %v40_v22  ;;  %576 = vmatmul.msk.f32.gmra.mxu1 %vm76_vm0, %v40_v22 }
  0x83   :  { %585 = vmatmul.msk.f32.gmra.mxu2 %vm76_vm0, %v41_v23  ;;  %593 = vmatmul.msk.f32.gmra.mxu3 %vm76_vm0, %v41_v23 }
  0x88   :  { %569 = vmatmul.msk.f32.gmra.mxu0 %vm76_vm0, %v41_v23  ;;  %577 = vmatmul.msk.f32.gmra.mxu1 %vm76_vm0, %v41_v23 }
  0x8d   :  { %v118_v29 = vpop.f32.mrf.mxu0  ;;  %v159_v30 = vpop.f32.mrf.mxu1 }
  0x8e   :  { %v119_v31 = vadd.f32 %v118_v29, %v818_v25  ;;  %v160_v32 = vadd.f32 %v159_v30, %v821_v26  ;;  %v200_v33 = vpop.f32.mrf.mxu2  ;;  %v241_v34 = vpop.f32.mrf.mxu3 }
  0x8f   :  { %v201_v35 = vadd.f32 %v200_v33, %v824_v27  ;;  %v242_v36 = vadd.f32 %v241_v34, %v827_v28  ;;  %v865_v34 = vperm.slane %v813_v24, 4 }
  0x90   :  { %429 = vst [vmem:[#allocation5] sm:$0xff] %v119_v31 }
  0x91   :  { %430 = vst [vmem:[#allocation5 + $0x8] sm:$0xff] %v160_v32 }
  0x92   :  { %431 = vst [vmem:[#allocation5 + $0x10] sm:$0xff] %v201_v35  ;;  %v868_v35 = vperm.slane %v813_v24, 5 }
  0x93   :  { %432 = vst [vmem:[#allocation5 + $0x18] sm:$0xff] %v242_v36 }
  0x95   :  { %v121_v37 = vpop.f32.mrf.mxu0  ;;  %v162_v38 = vpop.f32.mrf.mxu1 }
  0x96   :  { %v122_v39 = vadd.f32 %v121_v37, %v818_v25  ;;  %v163_v40 = vadd.f32 %v162_v38, %v821_v26  ;;  %v203_v41 = vpop.f32.mrf.mxu2  ;;  %v244_v42 = vpop.f32.mrf.mxu3 }
  0x97   :  { %v204_v43 = vadd.f32 %v203_v41, %v824_v27  ;;  %v245_v44 = vadd.f32 %v244_v42, %v827_v28 }
  0x98   :  { %433 = vst [vmem:[#allocation5 + $0x20] sm:$0xff] %v122_v39 }
  0x99   :  { %434 = vst [vmem:[#allocation5 + $0x28] sm:$0xff] %v163_v40 }
  0x9a   :  { %435 = vst [vmem:[#allocation5 + $0x30] sm:$0xff] %v204_v43 }
  0x9b   :  { %436 = vst [vmem:[#allocation5 + $0x38] sm:$0xff] %v245_v44 }
  0x9d   :  { %v124_v45 = vpop.f32.mrf.mxu0  ;;  %v165_v46 = vpop.f32.mrf.mxu1 }
  0x9e   :  { %v125_v47 = vadd.f32 %v124_v45, %v818_v25  ;;  %v166_v48 = vadd.f32 %v165_v46, %v821_v26  ;;  %v206_v49 = vpop.f32.mrf.mxu2  ;;  %v247_v50 = vpop.f32.mrf.mxu3 }
  0x9f   :  { %v207_v51 = vadd.f32 %v206_v49, %v824_v27  ;;  %v248_v52 = vadd.f32 %v247_v50, %v827_v28 }
  0xa0   :  { %437 = vst [vmem:[#allocation5 + $0x40] sm:$0xff] %v125_v47 }
  0xa1   :  { %438 = vst [vmem:[#allocation5 + $0x48] sm:$0xff] %v166_v48 }
  0xa2   :  { %439 = vst [vmem:[#allocation5 + $0x50] sm:$0xff] %v207_v51 }
  0xa3   :  { %440 = vst [vmem:[#allocation5 + $0x58] sm:$0xff] %v248_v52 }
  0xa5   :  { %v127_v53 = vpop.f32.mrf.mxu0  ;;  %v168_v54 = vpop.f32.mrf.mxu1 }
  0xa6   :  { %v128_v55 = vadd.f32 %v127_v53, %v818_v25  ;;  %v169_v56 = vadd.f32 %v168_v54, %v821_v26  ;;  %v209_v57 = vpop.f32.mrf.mxu2  ;;  %v250_v58 = vpop.f32.mrf.mxu3 }
  0xa7   :  { %v210_v59 = vadd.f32 %v209_v57, %v824_v27  ;;  %v251_v60 = vadd.f32 %v250_v58, %v827_v28 }
  0xa8   :  { %441 = vst [vmem:[#allocation5 + $0x60] sm:$0xff] %v128_v55 }
  0xa9   :  { %442 = vst [vmem:[#allocation5 + $0x68] sm:$0xff] %v169_v56 }
  0xaa   :  { %443 = vst [vmem:[#allocation5 + $0x70] sm:$0xff] %v210_v59 }
  0xab   :  { %444 = vst [vmem:[#allocation5 + $0x78] sm:$0xff] %v251_v60 }
  0xad   :  { %v130_v61 = vpop.f32.mrf.mxu0  ;;  %v171_v62 = vpop.f32.mrf.mxu1 }
  0xae   :  { %v131_v63 = vadd.f32 %v130_v61, %v818_v25  ;;  %v172_v0 = vadd.f32 %v171_v62, %v821_v26  ;;  %v212_v1 = vpop.f32.mrf.mxu2  ;;  %v253_v2 = vpop.f32.mrf.mxu3 }
  0xaf   :  { %v213_v3 = vadd.f32 %v212_v1, %v824_v27  ;;  %v254_v4 = vadd.f32 %v253_v2, %v827_v28 }
  0xb0   :  { %445 = vst [vmem:[#allocation5 + $0x80] sm:$0xff] %v131_v63 }
  0xb1   :  { %446 = vst [vmem:[#allocation5 + $0x88] sm:$0xff] %v172_v0 }
  0xb2   :  { %447 = vst [vmem:[#allocation5 + $0x90] sm:$0xff] %v213_v3 }
  0xb3   :  { %448 = vst [vmem:[#allocation5 + $0x98] sm:$0xff] %v254_v4 }
  0xb5   :  { %v133_v5 = vpop.f32.mrf.mxu0  ;;  %v174_v6 = vpop.f32.mrf.mxu1 }
  0xb6   :  { %v134_v7 = vadd.f32 %v133_v5, %v818_v25  ;;  %v175_v8 = vadd.f32 %v174_v6, %v821_v26  ;;  %v215_v9 = vpop.f32.mrf.mxu2  ;;  %v256_v10 = vpop.f32.mrf.mxu3 }
  0xb7   :  { %v216_v11 = vadd.f32 %v215_v9, %v824_v27  ;;  %v257_v12 = vadd.f32 %v256_v10, %v827_v28 }
  0xb8   :  { %449 = vst [vmem:[#allocation5 + $0xa0] sm:$0xff] %v134_v7 }
  0xb9   :  { %450 = vst [vmem:[#allocation5 + $0xa8] sm:$0xff] %v175_v8 }
  0xba   :  { %451 = vst [vmem:[#allocation5 + $0xb0] sm:$0xff] %v216_v11 }
  0xbb   :  { %452 = vst [vmem:[#allocation5 + $0xb8] sm:$0xff] %v257_v12 }
  0xbd   :  { %v136_v13 = vpop.f32.mrf.mxu0  ;;  %v177_v14 = vpop.f32.mrf.mxu1 }
  0xbe   :  { %v137_v15 = vadd.f32 %v136_v13, %v818_v25  ;;  %v178_v16 = vadd.f32 %v177_v14, %v821_v26  ;;  %v218_v17 = vpop.f32.mrf.mxu2  ;;  %v259_v18 = vpop.f32.mrf.mxu3 }
  0xbf   :  { %v219_v19 = vadd.f32 %v218_v17, %v824_v27  ;;  %v260_v20 = vadd.f32 %v259_v18, %v827_v28 }
  0xc0   :  { %453 = vst [vmem:[#allocation5 + $0xc0] sm:$0xff] %v137_v15 }
  0xc1   :  { %454 = vst [vmem:[#allocation5 + $0xc8] sm:$0xff] %v178_v16 }
  0xc2   :  { %455 = vst [vmem:[#allocation5 + $0xd0] sm:$0xff] %v219_v19 }
  0xc3   :  { %456 = vst [vmem:[#allocation5 + $0xd8] sm:$0xff] %v260_v20 }
  0xc5   :  { %v139_v21 = vpop.f32.mrf.mxu0  ;;  %v180_v22 = vpop.f32.mrf.mxu1 }
  0xc6   :  { %v140_v23 = vadd.f32 %v139_v21, %v818_v25  ;;  %v181_v29 = vadd.f32 %v180_v22, %v821_v26  ;;  %v221_v30 = vpop.f32.mrf.mxu2  ;;  %v262_v31 = vpop.f32.mrf.mxu3  ;;  %v871_v25 = vperm.slane %v813_v24, 6  ;;  %v874_v26 = vperm.slane %v813_v24, 7 }
  0xc7   :  { %v222_v32 = vadd.f32 %v221_v30, %v824_v27  ;;  %v263_v33 = vadd.f32 %v262_v31, %v827_v28 }
  0xc8   :  { %457 = vst [vmem:[#allocation5 + $0xe0] sm:$0xff] %v140_v23 }
  0xc9   :  { %458 = vst [vmem:[#allocation5 + $0xe8] sm:$0xff] %v181_v29 }
  0xca   :  { %459 = vst [vmem:[#allocation5 + $0xf0] sm:$0xff] %v222_v32 }
  0xcb   :  { %460 = vst [vmem:[#allocation5 + $0xf8] sm:$0xff] %v263_v33 }
  0xcc   :  { %505 = dma.vmem_to_hbm [thread:$0]  %s498_s12, 4096, %s500_s15, [#allocation4], %s683_s3, %s683_s3, %s684_s16  }
  0xcd   :  { %v282_v27 = vpop.f32.mrf.mxu0  ;;  %v323_v28 = vpop.f32.mrf.mxu1 }
  0xce   :  { %v283_v36 = vadd.f32 %v282_v27, %v865_v34  ;;  %v324_v37 = vadd.f32 %v323_v28, %v868_v35  ;;  %v364_v38 = vpop.f32.mrf.mxu2  ;;  %v405_v39 = vpop.f32.mrf.mxu3 }
  0xcf   :  { %v365_v40 = vadd.f32 %v364_v38, %v871_v25  ;;  %v406_v41 = vadd.f32 %v405_v39, %v874_v26 }
  0xd0   :  { %461 = vst [vmem:[#allocation6] sm:$0xff] %v283_v36 }
  0xd1   :  { %462 = vst [vmem:[#allocation6 + $0x8] sm:$0xff] %v324_v37 }
  0xd2   :  { %463 = vst [vmem:[#allocation6 + $0x10] sm:$0xff] %v365_v40 }
  0xd3   :  { %464 = vst [vmem:[#allocation6 + $0x18] sm:$0xff] %v406_v41 }
  0xd5   :  { %v285_v24 = vpop.f32.mrf.mxu0  ;;  %v326_v42 = vpop.f32.mrf.mxu1 }
  0xd6   :  { %v286_v43 = vadd.f32 %v285_v24, %v865_v34  ;;  %v327_v44 = vadd.f32 %v326_v42, %v868_v35  ;;  %v367_v45 = vpop.f32.mrf.mxu2  ;;  %v408_v46 = vpop.f32.mrf.mxu3 }
  0xd7   :  { %v368_v47 = vadd.f32 %v367_v45, %v871_v25  ;;  %v409_v48 = vadd.f32 %v408_v46, %v874_v26 }
  0xd8   :  { %465 = vst [vmem:[#allocation6 + $0x20] sm:$0xff] %v286_v43 }
  0xd9   :  { %466 = vst [vmem:[#allocation6 + $0x28] sm:$0xff] %v327_v44 }
  0xda   :  { %467 = vst [vmem:[#allocation6 + $0x30] sm:$0xff] %v368_v47 }
  0xdb   :  { %468 = vst [vmem:[#allocation6 + $0x38] sm:$0xff] %v409_v48 }
  0xdd   :  { %v288_v49 = vpop.f32.mrf.mxu0  ;;  %v329_v50 = vpop.f32.mrf.mxu1 }
  0xde   :  { %v289_v51 = vadd.f32 %v288_v49, %v865_v34  ;;  %v330_v52 = vadd.f32 %v329_v50, %v868_v35  ;;  %v370_v53 = vpop.f32.mrf.mxu2  ;;  %v411_v54 = vpop.f32.mrf.mxu3 }
  0xdf   :  { %v371_v55 = vadd.f32 %v370_v53, %v871_v25  ;;  %v412_v56 = vadd.f32 %v411_v54, %v874_v26 }
  0xe0   :  { %469 = vst [vmem:[#allocation6 + $0x40] sm:$0xff] %v289_v51 }
  0xe1   :  { %470 = vst [vmem:[#allocation6 + $0x48] sm:$0xff] %v330_v52 }
  0xe2   :  { %471 = vst [vmem:[#allocation6 + $0x50] sm:$0xff] %v371_v55 }
  0xe3   :  { %472 = vst [vmem:[#allocation6 + $0x58] sm:$0xff] %v412_v56 }
  0xe5   :  { %v291_v57 = vpop.f32.mrf.mxu0  ;;  %v332_v58 = vpop.f32.mrf.mxu1 }
  0xe6   :  { %v292_v59 = vadd.f32 %v291_v57, %v865_v34  ;;  %v333_v60 = vadd.f32 %v332_v58, %v868_v35  ;;  %v373_v61 = vpop.f32.mrf.mxu2  ;;  %v414_v62 = vpop.f32.mrf.mxu3 }
  0xe7   :  { %v374_v63 = vadd.f32 %v373_v61, %v871_v25  ;;  %v415_v0 = vadd.f32 %v414_v62, %v874_v26 }
  0xe8   :  { %473 = vst [vmem:[#allocation6 + $0x60] sm:$0xff] %v292_v59 }
  0xe9   :  { %474 = vst [vmem:[#allocation6 + $0x68] sm:$0xff] %v333_v60 }
  0xea   :  { %475 = vst [vmem:[#allocation6 + $0x70] sm:$0xff] %v374_v63 }
  0xeb   :  { %476 = vst [vmem:[#allocation6 + $0x78] sm:$0xff] %v415_v0 }
  0xed   :  { %v294_v1 = vpop.f32.mrf.mxu0  ;;  %v335_v2 = vpop.f32.mrf.mxu1 }
  0xee   :  { %v295_v3 = vadd.f32 %v294_v1, %v865_v34  ;;  %v336_v4 = vadd.f32 %v335_v2, %v868_v35  ;;  %v376_v5 = vpop.f32.mrf.mxu2  ;;  %v417_v6 = vpop.f32.mrf.mxu3 }
  0xef   :  { %v377_v7 = vadd.f32 %v376_v5, %v871_v25  ;;  %v418_v8 = vadd.f32 %v417_v6, %v874_v26 }
  0xf0   :  { %477 = vst [vmem:[#allocation6 + $0x80] sm:$0xff] %v295_v3 }
  0xf1   :  { %478 = vst [vmem:[#allocation6 + $0x88] sm:$0xff] %v336_v4 }
  0xf2   :  { %479 = vst [vmem:[#allocation6 + $0x90] sm:$0xff] %v377_v7 }
  0xf3   :  { %480 = vst [vmem:[#allocation6 + $0x98] sm:$0xff] %v418_v8 }
  0xf5   :  { %v297_v9 = vpop.f32.mrf.mxu0  ;;  %v338_v10 = vpop.f32.mrf.mxu1 }
  0xf6   :  { %v298_v11 = vadd.f32 %v297_v9, %v865_v34  ;;  %v339_v12 = vadd.f32 %v338_v10, %v868_v35  ;;  %v379_v13 = vpop.f32.mrf.mxu2  ;;  %v420_v14 = vpop.f32.mrf.mxu3 }
  0xf7   :  { %v380_v15 = vadd.f32 %v379_v13, %v871_v25  ;;  %v421_v16 = vadd.f32 %v420_v14, %v874_v26 }
  0xf8   :  { %481 = vst [vmem:[#allocation6 + $0xa0] sm:$0xff] %v298_v11 }
  0xf9   :  { %482 = vst [vmem:[#allocation6 + $0xa8] sm:$0xff] %v339_v12 }
  0xfa   :  { %483 = vst [vmem:[#allocation6 + $0xb0] sm:$0xff] %v380_v15 }
  0xfb   :  { %484 = vst [vmem:[#allocation6 + $0xb8] sm:$0xff] %v421_v16 }
  0xfd   :  { %v300_v17 = vpop.f32.mrf.mxu0  ;;  %v341_v18 = vpop.f32.mrf.mxu1 }
  0xfe   :  { %v301_v19 = vadd.f32 %v300_v17, %v865_v34  ;;  %v342_v20 = vadd.f32 %v341_v18, %v868_v35  ;;  %v382_v21 = vpop.f32.mrf.mxu2  ;;  %v423_v22 = vpop.f32.mrf.mxu3 }
  0xff   :  { %v383_v23 = vadd.f32 %v382_v21, %v871_v25  ;;  %v424_v29 = vadd.f32 %v423_v22, %v874_v26 }
 0x100   :  { %485 = vst [vmem:[#allocation6 + $0xc0] sm:$0xff] %v301_v19 }
 0x101   :  { %486 = vst [vmem:[#allocation6 + $0xc8] sm:$0xff] %v342_v20 }
 0x102   :  { %487 = vst [vmem:[#allocation6 + $0xd0] sm:$0xff] %v383_v23 }
 0x103   :  { %488 = vst [vmem:[#allocation6 + $0xd8] sm:$0xff] %v424_v29 }
 0x105   :  { %v303_v30 = vpop.f32.mrf.mxu0  ;;  %v344_v31 = vpop.f32.mrf.mxu1 }
 0x106   :  { %v304_v32 = vadd.f32 %v303_v30, %v865_v34  ;;  %v345_v33 = vadd.f32 %v344_v31, %v868_v35  ;;  %v385_v27 = vpop.f32.mrf.mxu2  ;;  %v426_v28 = vpop.f32.mrf.mxu3 }
 0x107   :  { %v386_v36 = vadd.f32 %v385_v27, %v871_v25  ;;  %v427_v37 = vadd.f32 %v426_v28, %v874_v26 }
 0x108   :  { %489 = vst [vmem:[#allocation6 + $0xe0] sm:$0xff] %v304_v32 }
 0x109   :  { %490 = vst [vmem:[#allocation6 + $0xe8] sm:$0xff] %v345_v33 }
 0x10a   :  { %491 = vst [vmem:[#allocation6 + $0xf0] sm:$0xff] %v386_v36 }
 0x10b   :  { %492 = vst [vmem:[#allocation6 + $0xf8] sm:$0xff] %v427_v37 }
 0x10c   :  { %518 = dma.vmem_to_hbm [thread:$0]  %s511_s18, 4096, %s513_s21, [#allocation7], %s683_s3, %s683_s3, %s684_s16  }
 0x10d   :  { %675 = dma.done.wait [#allocation4], 4096  }
 0x10e   :  { %676 = vsyncadd [#allocation4], 4294963200 }
 0x10f   :  { %677 = dma.done.wait [#allocation7], 4096  }
 0x110   :  { %678 = vsyncadd [#allocation7], 4294963200 }
 0x111   :  { %527 = vsyncpa [#allocation3], 1 }
 0x112   :  { %528 = vsyncpa [#allocation4], 1 }
 0x113   :  { %529 = vsyncpa [#allocation7], 1 }

</bundles_post_ra>
